<compile_context>
chip_gen: v7x
topology: tpu7x:2x2x1
jax: 0.10.0
libtpu: 0.0.40
codegen_flags: <defaults>
</compile_context>

<pallas_src>
import math

import jax
import jax.numpy as jnp
from jax.experimental import pallas as pl
from jax.experimental.pallas import tpu as pltpu

_LANE = 128
_SUBLANE_BYTES = 32  # one packed sublane carries 32 bytes per lane


def _cdiv(a, b):
    return -(-a // b)


def _round_up(a, b):
    return _cdiv(a, b) * b


def _vmem_budgets():
    """(vmem_limit_bytes for CompilerParams, byte budget for the tile picker)."""
    phys = 128 * 1024 * 1024
    try:
        info = pltpu.get_tpu_info()
        cap = getattr(info, "vmem_capacity_bytes", None)
        if cap:
            phys = int(cap)
    except Exception:
        pass
    # Half the physical VMEM as the scoped limit (64 MiB on v5e/v6e, 32 MiB on
    # v7x's 64 MiB per-core VMEM); picker uses 3/4 of that so the compiler has
    # headroom for internal scratch.
    vmem_limit = min(phys // 2, 96 * 1024 * 1024)
    return vmem_limit, (vmem_limit * 3) // 4


def _pick_tile_rows(n_rows, bytes_per_row, pack, budget, min_steps=8):
    """Rows per grid step for a mem-bound copy.

    Largest tile whose double-buffered (in + out) footprint fits `budget`,
    floored at ~2 MiB of traffic per step (amortizes the ~0.35us/step
    overhead) and capped so a large row count still yields >= `min_steps`
    steps (pipelining overlap; >= 2 blocks per TensorCore on multi-core
    chips).  No divisibility requirement: the grid uses cdiv + partial tail.
    """
    tm = max(pack, budget // (2 * max(1, bytes_per_row)))
    row_floor = max(pack, _cdiv(2 << 20, max(1, bytes_per_row)))
    tm = min(tm, max(row_floor, _cdiv(n_rows, min_steps)))
    tm = max(pack, (tm // pack) * pack)
    return min(tm, _round_up(n_rows, pack))


def _stack2d_kernel(roi_ref, xf_ref, o_ref):
    # roi_ref: (tm, R*F), xf_ref: (tm, F), o_ref: (tm, (R+1)*F).
    # Lane-dense: both stores are contiguous full-width lane slices.
    split = roi_ref.shape[1]
    o_ref[:, :split] = roi_ref[...]
    o_ref[:, split:] = xf_ref[...]


def _make_stack4d_kernel(num_rois, feat_dim):
    def kernel(roi_ref, xf_ref, o_ref):
        # roi_ref: (tb, R, k, F), xf_ref: (tb, k, F), o_ref: (tb, k, (R+1)*F).
        # j indexes a leading (untiled) axis, so roi_ref[:, j] is a cheap
        # address-offset load; stores land at static lane offsets j*F.
        for j in range(num_rois):
            o_ref[:, :, j * feat_dim:(j + 1) * feat_dim] = roi_ref[:, j, :, :]
        o_ref[:, :, num_rois * feat_dim:] = xf_ref[...]
    return kernel


def stack_forward(roi_pool, x_final, *, num_rois, feat_dim, block_rows=None):
    R, F = int(num_rois), int(feat_dim)
    assert R >= 1 and F >= 1
    B = roi_pool.shape[0]
    assert roi_pool.shape[1] == R, roi_pool.shape
    rest = math.prod(roi_pool.shape[2:]) if roi_pool.ndim > 2 else 1
    assert rest % F == 0, (rest, F)  # mirrors torch's .view(-1, feat_dim)
    k = rest // F
    M = B * k
    assert x_final.size == M * F, (x_final.shape, M, F)

    # torch.stack requires matching dtypes; promote (no-op when already equal).
    out_dtype = jnp.result_type(roi_pool.dtype, x_final.dtype)
    roi_pool = roi_pool.astype(out_dtype)
    x_final = x_final.astype(out_dtype)
    itemsize = jnp.dtype(out_dtype).itemsize
    sub_pack = max(8, _SUBLANE_BYTES // itemsize)  # 8 f32 / 16 bf16 / 32 int8

    vmem_limit, budget = _vmem_budgets()
    cparams = pltpu.CompilerParams(
        dimension_semantics=("parallel",), vmem_limit_bytes=vmem_limit)

    if k == 1:
        # Fast path: fully lane-dense 2D copy (M, R*F)+(M, F) -> (M, (R+1)*F).
        roi2 = roi_pool.reshape(M, R * F)    # zero-cost (contiguous)
        xf2 = x_final.reshape(M, F)          # zero-cost
        bytes_per_row = (2 * R + 2) * F * itemsize  # roi + xf + out per row
        tm = (block_rows if block_rows is not None
              else _pick_tile_rows(M, bytes_per_row, sub_pack, budget))
        out2 = pl.pallas_call(
            _stack2d_kernel,
            out_shape=jax.ShapeDtypeStruct((M, (R + 1) * F), out_dtype),
            grid=(_cdiv(M, tm),),
            in_specs=[pl.BlockSpec((tm, R * F), lambda i: (i, 0)),
                      pl.BlockSpec((tm, F), lambda i: (i, 0))],
            out_specs=pl.BlockSpec((tm, (R + 1) * F), lambda i: (i, 0)),
            compiler_params=cparams,
        )(roi2, xf2)
        return out2.reshape(M, R + 1, F)     # zero-cost

    # General path (k > 1): address the original (B, R, k, F) layout directly
    # so the row permutation roi[b, j, kk] -> out[b*k + kk, j] happens in the
    # tile DMA / in-VMEM lane placement instead of a separate materialized XLA
    # transpose (which would cost a full extra HBM read+write of roi_pool).
    roi4 = roi_pool.reshape(B, R, k, F)      # zero-cost
    xf3 = x_final.reshape(B, k, F)           # zero-cost
    kpad = _round_up(k, sub_pack)            # VMEM pads last two block dims
    fpad = _round_up(F, _LANE)
    ofpad = _round_up((R + 1) * F, _LANE)
    bytes_per_b = (R * kpad * fpad + kpad * fpad + kpad * ofpad) * itemsize
    tb = (block_rows if block_rows is not None
          else _pick_tile_rows(B, bytes_per_b, 1, budget))
    out3 = pl.pallas_call(
        _make_stack4d_kernel(R, F),
        out_shape=jax.ShapeDtypeStruct((B, k, (R + 1) * F), out_dtype),
        grid=(_cdiv(B, tb),),
        in_specs=[pl.BlockSpec((tb, R, k, F), lambda i: (i, 0, 0, 0)),
                  pl.BlockSpec((tb, k, F), lambda i: (i, 0, 0))],
        out_specs=pl.BlockSpec((tb, k, (R + 1) * F), lambda i: (i, 0, 0)),
        compiler_params=cparams,
    )(roi4, xf3)
    return out3.reshape(M, R + 1, F)         # zero-cost


if __name__ == "__main__":
    key = jax.random.PRNGKey(0)
    k1, k2, k3, k4 = jax.random.split(key, 4)

    # Case 1: the common layout (k == 1): roi_pool (B, R, F), x_final (B, F).
    # Large enough for a multi-step grid with a partial tail block.
    B, R, F = 1024, 6, 128
    roi_pool = jax.random.normal(k1, (B, R, F), jnp.float32)
    x_final = jax.random.normal(k2, (B, F), jnp.float32)
    out = jax.block_until_ready(
        stack_forward(roi_pool, x_final, num_rois=R, feat_dim=F))
    ref = jnp.stack([roi_pool[:, j].reshape(-1, F) for j in range(R)]
                    + [x_final.reshape(-1, F)], axis=1)
    assert out.shape == ref.shape == (B, R + 1, F), (out.shape, ref.shape)
    assert bool(jnp.array_equal(out, ref)), float(jnp.max(jnp.abs(out - ref)))

    # Case 2: extra trailing dims (k > 1): roi_pool (B, R, 2, F) -> M = 2*B.
    B2, R2, K2, F2 = 8, 4, 2, 128
    roi_pool2 = jax.random.normal(k3, (B2, R2, K2, F2), jnp.float32)
    x_final2 = jax.random.normal(k4, (B2, K2, F2), jnp.float32)
    out2 = jax.block_until_ready(
        stack_forward(roi_pool2, x_final2, num_rois=R2, feat_dim=F2))
    ref2 = jnp.stack([roi_pool2[:, j].reshape(-1, F2) for j in range(R2)]
                     + [x_final2.reshape(-1, F2)], axis=1)
    assert out2.shape == ref2.shape == (B2 * K2, R2 + 1, F2)
    assert bool(jnp.array_equal(out2, ref2))

    print("KERNEL_OK")
</pallas_src>

<mosaic_0001>
module attributes {stable_mosaic.version = 11 : i64} {
  func.func @_stack2d_kernel(%arg0: i32, %arg1: memref<288x768xf32, #tpu.memory_space<vmem>>, %arg2: memref<288x128xf32, #tpu.memory_space<vmem>>, %arg3: memref<288x896xf32, #tpu.memory_space<vmem>>) attributes {dimension_semantics = [#tpu.dimension_semantics<parallel>], iteration_bounds = array<i64: 4>, scalar_prefetch = 0 : i64, scratch_operands = 0 : i64, tpu.core_type = #tpu.core_type<tc>, window_params = [{transform_indices = @transform_0, window_bounds = array<i64: 288, 768>}, {transform_indices = @transform_1, window_bounds = array<i64: 288, 128>}, {transform_indices = @transform_2, window_bounds = array<i64: 288, 896>}]} {
    %c0 = arith.constant 0 : index
    %c0_0 = arith.constant 0 : index
    %0 = vector.load %arg1[%c0, %c0_0] : memref<288x768xf32, #tpu.memory_space<vmem>>, vector<288x768xf32>
    %c0_1 = arith.constant 0 : index
    %c0_2 = arith.constant 0 : index
    %1 = vector.load %arg3[%c0_1, %c0_2] : memref<288x896xf32, #tpu.memory_space<vmem>>, vector<288x768xf32>
    tpu.vector_store %arg3[%c0_1, %c0_2], %0 {strides = array<i32>} : memref<288x896xf32, #tpu.memory_space<vmem>>, vector<288x768xf32>,
    %c0_3 = arith.constant 0 : index
    %c0_4 = arith.constant 0 : index
    %2 = vector.load %arg2[%c0_3, %c0_4] : memref<288x128xf32, #tpu.memory_space<vmem>>, vector<288x128xf32>
    %c0_5 = arith.constant 0 : index
    %c768 = arith.constant 768 : index
    %3 = vector.load %arg3[%c0_5, %c768] : memref<288x896xf32, #tpu.memory_space<vmem>>, vector<288x128xf32>
    tpu.vector_store %arg3[%c0_5, %c768], %2 {strides = array<i32>} : memref<288x896xf32, #tpu.memory_space<vmem>>, vector<288x128xf32>,
    return
  }
  func.func @transform_0(%arg0: i32) -> (i32, i32) {
    %c0_i32 = arith.constant 0 : i32
    %c0_i32_0 = arith.constant 0 : i32
    return %arg0, %c0_i32 : i32, i32
  }
  func.func @transform_1(%arg0: i32) -> (i32, i32) {
    %c0_i32 = arith.constant 0 : i32
    %c0_i32_0 = arith.constant 0 : i32
    return %arg0, %c0_i32 : i32, i32
  }
  func.func @transform_2(%arg0: i32) -> (i32, i32) {
    %c0_i32 = arith.constant 0 : i32
    %c0_i32_0 = arith.constant 0 : i32
    return %arg0, %c0_i32 : i32, i32
  }
}

</mosaic_0001>

<bundles_post_ra>
// kernel: tpu_custom_call.1
= control target key start
LH: loop header
LB: loop body
LE: loop exit
PB: predicated region body
PF: predicated region fallthrough
CT: control target
= control target key end

     0   :  { %7 = vsyncpa [#allocation3], 0  ;;  %s1819_s0 = inlined_call_operand.hbm [shape: f32[1024,768], index: 0, kind: input, shape index: {}]   ;;  %s1820_s1 = inlined_call_operand.hbm [shape: f32[1024,128], index: 1, kind: input, shape index: {}]   ;;  %s1821_s2 = inlined_call_operand.hbm [shape: f32[1024,896], index: 2, kind: output, shape index: {}]  }
   0x1   :  { %9 = vsyncpa [#allocation3 + $0x1], 0 }
   0x2   :  { %10 = vsyncpa [#allocation6], 0 }
   0x3   :  { %12 = vsyncpa [#allocation6 + $0x1], 0 }
   0x4   :  { %13 = vsyncpa [#allocation4], 0 }
   0x5   :  { %15 = vsyncpa [#allocation4 + $0x1], 0  ;;  %s1084_s9 = smov 0   ;;  %s1086_s10 = smov 0  }
   0x6   :  { %s1088_s11 = smov 0   ;;  %s1090_s12 = smov 0  }
   0x7 LB: > { %s1105_s13 = sadd.s32 4294967295, %s1058_s12   ;;  %s855_s14 = sadd.s32 4294967294, %s1058_s12   ;;  %s1058_s12 = sphi %s1090_s12, %s1831_s12   ;;  %s1054_s11 = sphi %s1088_s11, %s1830_s11   ;;  %s1050_s10 = sphi %s1086_s10, %s1829_s10   ;;  %s1046_s9 = sphi %s1084_s9, %s1828_s9  }
   0x8   : > { %s1109_s15 = sadd.s32 1, %s1058_s12   ;;  %s28_s16 = sadd.s32 1, %s1054_s11 }
   0x9   : > { %s25_s17 = ssub.s32 %s1058_s12, %s1109_s15  ;;  %p35_p0 = scmp.ne.s32.totalorder %s1054_s11, %s1050_s10 }
   0xa   : > { %p26_p1 = scmp.eq.s32.totalorder %s25_s17, 0  ;;  %p36_p2 = scmp.eq.s32.totalorder %s1058_s12, 0 }
   0xb   : > { %p41_p3 = scmp.ne.s32.totalorder %s1050_s10, %s1046_s9  ;;  %p42_p4 = scmp.eq.s32.totalorder %s1105_s13, 0 }
   0xc   : > { %s1121_s18 = scalar_select %p26_p1, %s1054_s11, %s28_s16  }
   0xd   : > { %p1123_p5 = por %p36_p2, %p35_p0  ;;  %p1127_p6 = por %p42_p4, %p41_p3 }
   0xe   : > { %p91_p7 = scmp.eq.s32.totalorder %s1105_s13, 3  ;;  %p97_p8 = scmp.eq.s32.totalorder %s855_s14, 3 }
   0xf   : > { %p857_p11 = scmp.ge.s32.totalorder %s1058_s12, 4 }
  0x10   : > { %p1132_p9 = por %p91_p7, %p35_p0  ;;  %p1136_p10 = por %p97_p8, %p41_p3 }
  0x11   : > { %113 = sbr.rel (%p857_p11) target bundleno = 95 (0x5f), region = 16 }
  0x12   : > { %s1824_s21 = scalar_select %p1132_p9, 1, 0 }
  0x13   : > { %s1825_s22 = scalar_select %p1136_p10, 1, 0 }
  0x18   : > { %116 = sbr.rel (!%p1123_p5) target bundleno = 60 (0x3c), region = 20  ;;  %s117_s23 = sand.u32 (%p1123_p5), 1, %s1054_s11  }
  0x19   : > { %s122_s24 = smul.u32 (%p1123_p5), 36, %s1058_s12  ;;  %s1148_s29 = scalar_lea.sflag (%p1123_p5), [#allocation3], %s117_s23 }
  0x1a   : > { %s877_s25 = smul.u32 (%p1123_p5), 1728, %s117_s23 }
  0x1b   : > { %s123_s26 = ssub.s32 (%p1123_p5), 128, %s122_s24 }
  0x1c   : > { %p124_p12 = scmp.lt.s32.totalorder (%p1123_p5), %s123_s26, 36  ;;  %s121_s30 = scalar_lea.vmem (%p1123_p5), [#allocation2], %s877_s25 }
  0x1f   : > { %s1833_s26 = smov (!%p124_p12, %s123_s26), 36 }
  0x20   : > { %s1145_s27 = smul.u32 768, %s1833_s26 }
  0x22   : > { %s129_s28 = ssub.s32 27648, %s1145_s27 }
  0x23   : > { %130 = vsyncadd %s1148_s29, %s129_s28  ;;  %p860_p13 = scmp.ne.s32.totalorder %s1145_s27, 0  ;;  %s891_s3 = smul.u32 27648, %s1058_s12 }
  0x24   : > { %s136_s4 = sshll.u32 %s121_s30, 4  ;;  %s936_s17 = scalar_lea.hbm %s1819_s0, 98304  ;;  %s1158_s4 = int_to_ptr.vmem [resolvable:$true] %s136_s4 }
  0x25   : > { %s1156_s7 = scalar_lea.hbm %s1819_s0, %s891_s3 }
  0x26   : > { %s932_s8 = scalar_lea.hbm %s1156_s7, %s1145_s27  ;;  %p937_p3 = scmp.lt.u32.totalorder %s1156_s7, %s1819_s0 }
  0x27   : > { %p933_p0 = scmp.ne.s32.totalorder %s1156_s7, %s932_s8  ;;  %p938_p4 = scmp.lt.u32.totalorder %s936_s17, %s932_s8 }
  0x28   : > { %p940_p8 = scmp.lt.u32.totalorder %s932_s8, %s1156_s7 }
  0x29   : > { %p934_p1 = pnand %p933_p0, %p860_p13  ;;  %p939_p7 = por %p938_p4, %p937_p3 }
  0x2b   : > { %p935_p2 = pneg %p934_p1  ;;  %p941_p11 = por %p940_p8, %p939_p7 }
  0x2d   : > { %p942_p12 = pnand %p941_p11, %p935_p2 }
  0x2f   : > { %945 = shalt.err (!%p942_p12)
}
  0x30   : > { %s946_s25 = scalar_lea.vmem %s1158_s4, %s1145_s27  ;;  %s1060_s26 = smov [#allocation2]  }
  0x31   : > { %p947_p0 = scmp.ne.s32.totalorder %s1158_s4, %s946_s25  ;;  %s950_s28 = sshll.u32 %s1060_s26, 4  ;;  %s951_s28 = int_to_ptr.vmem [resolvable:$false] %s950_s28 }
  0x32   : > { %s952_s30 = scalar_lea.vmem %s951_s28, 55296  ;;  %p953_p9 = scmp.lt.s32.totalorder %s1158_s4, %s951_s28 }
  0x33   : > { %p948_p1 = pnand %p947_p0, %p860_p13  ;;  %p954_p3 = scmp.lt.s32.totalorder %s952_s30, %s946_s25 }
  0x35   : > { %p949_p10 = pneg %p948_p1  ;;  %p955_p4 = por %p954_p3, %p953_p9 }
  0x37   : > { %p956_p7 = pnand %p955_p4, %p949_p10 }
  0x39   : > { %959 = shalt.err (!%p956_p7)
}
  0x3a   : > { %s1061_s3 = smov 768   ;;  %s1062_s5 = smov 48  }
  0x3b   : > { %142 = dma.hbm_to_vmem [thread:$0]  (%p860_p13), %s1156_s7, %s1145_s27, %s1158_s4, %s1148_s29, %s1061_s3, %s1061_s3, %s1062_s5  }
  0x3c PF: > { %145 = sbr.rel (!%p1123_p5) target bundleno = 95 (0x5f), region = 24  ;;  %s146_s6 = sand.u32 (%p1123_p5), 1, %s1054_s11  }
  0x3d   : > { %s151_s8 = smul.u32 (%p1123_p5), 36, %s1058_s12  ;;  %s1192_s24 = scalar_lea.sflag (%p1123_p5), [#allocation6], %s146_s6 }
  0x3e   : > { %s879_s14 = smul.u32 (%p1123_p5), 288, %s146_s6 }
  0x3f   : > { %s152_s16 = ssub.s32 (%p1123_p5), 128, %s151_s8 }
  0x40   : > { %p153_p9 = scmp.lt.s32.totalorder (%p1123_p5), %s152_s16, 36  ;;  %s150_s27 = scalar_lea.vmem (%p1123_p5), [#allocation5], %s879_s14 }
  0x43   : > { %s1835_s16 = smov (!%p153_p9, %s152_s16), 36 }
  0x44   : > { %s1189_s17 = sshll.u32 %s1835_s16, 7 }
  0x45   : > { %s157_s23 = ssub.s32 4608, %s1189_s17 }
  0x46   : > { %158 = vsyncadd %s1192_s24, %s157_s23  ;;  %p864_p5 = scmp.ne.s32.totalorder %s1189_s17, 0  ;;  %s876_s19 = smul.u32 4608, %s1058_s12 }
  0x47   : > { %s163_s29 = sshll.u32 %s150_s27, 4  ;;  %s964_s3 = scalar_lea.hbm %s1820_s1, 16384  ;;  %s1202_s29 = int_to_ptr.vmem [resolvable:$true] %s163_s29 }
  0x48   : > { %s1200_s25 = scalar_lea.hbm %s1820_s1, %s876_s19 }
  0x49   : > { %s960_s26 = scalar_lea.hbm %s1200_s25, %s1189_s17  ;;  %p965_p8 = scmp.lt.u32.totalorder %s1200_s25, %s1820_s1 }
  0x4a   : > { %p961_p10 = scmp.ne.s32.totalorder %s1200_s25, %s960_s26  ;;  %p966_p11 = scmp.lt.u32.totalorder %s964_s3, %s960_s26 }
  0x4b   : > { %p968_p0 = scmp.lt.u32.totalorder %s960_s26, %s1200_s25 }
  0x4c   : > { %p962_p13 = pnand %p961_p10, %p864_p5  ;;  %p967_p12 = por %p966_p11, %p965_p8 }
  0x4e   : > { %p963_p2 = pneg %p962_p13  ;;  %p969_p1 = por %p968_p0, %p967_p12 }
  0x50   : > { %p970_p3 = pnand %p969_p1, %p963_p2 }
  0x52   : > { %973 = shalt.err (!%p970_p3)
}
  0x53   : > { %s974_s8 = scalar_lea.vmem %s1202_s29, %s1189_s17  ;;  %s1063_s14 = smov [#allocation5]  }
  0x54   : > { %p975_p4 = scmp.ne.s32.totalorder %s1202_s29, %s974_s8  ;;  %s978_s16 = sshll.u32 %s1063_s14, 4  ;;  %s979_s16 = int_to_ptr.vmem [resolvable:$false] %s978_s16 }
  0x55   : > { %s980_s23 = scalar_lea.vmem %s979_s16, 9216  ;;  %p981_p10 = scmp.lt.s32.totalorder %s1202_s29, %s979_s16 }
  0x56   : > { %p976_p7 = pnand %p975_p4, %p864_p5  ;;  %p982_p13 = scmp.lt.s32.totalorder %s980_s23, %s974_s8 }
  0x58   : > { %p977_p9 = pneg %p976_p7  ;;  %p983_p8 = por %p982_p13, %p981_p10 }
  0x5a   : > { %p984_p11 = pnand %p983_p8, %p977_p9 }
  0x5c   : > { %987 = shalt.err (!%p984_p11)
}
  0x5d   : > { %s1064_s27 = smov 128   ;;  %s1065_s19 = smov 8  }
  0x5e   : > { %169 = dma.hbm_to_vmem [thread:$0]  (%p864_p5), %s1200_s25, %s1189_s17, %s1202_s29, %s1192_s24, %s1064_s27, %s1064_s27, %s1065_s19  }
  0x5f PF: > { %p868_p2 = scmp.ge.s32.totalorder %s1058_s12, 1  ;;  %p171_p12 = scmp.lt.s32.totalorder %s1058_s12, 5 }
  0x61   : > { %p172_p0 = pnand %p868_p2, %p171_p12 }
  0x62   : > { %s1232_s4 = sand.u32 (!%p172_p0), 1, %s1050_s10  }
  0x63   : > { %175 = sbr.rel (%p172_p0) target bundleno = 269 (0x10d), region = 28  ;;  %s178_s26 = scalar_lea.sflag (!%p172_p0), [#allocation3], %s1232_s4 }
  0x64   : > { %s880_s7 = smul.u32 (!%p172_p0), 1728, %s1232_s4 }
  0x66   : > { %s1236_s28 = scalar_lea.vmem (!%p172_p0), [#allocation2], %s880_s7 }
  0x6a   : > { %1033 = dma.done.wait (%p1127_p6), %s178_s26, 27648  }
  0x6b   : > { %1035 = vsyncadd (%p1127_p6), %s178_s26, 4294939648  ;;  %s881_s17 = smul.u32 288, %s1232_s4  ;;  %s187_s24 = scalar_lea.sflag [#allocation6], %s1232_s4 }
  0x6d   : > { %s1244_s29 = scalar_lea.vmem [#allocation5], %s881_s17 }
  0x6e   : > { %1037 = dma.done.wait (%p1127_p6), %s187_s24, 4608  }
  0x6f   : > { %1039 = vsyncadd (%p1127_p6), %s187_s24, 4294962688  ;;  %s882_s25 = smul.u32 2016, %s1232_s4  ;;  %v233_v0 = vld [vmem:[%s1236_s28] sm:$0xff]  ;;  %v234_v1 = vld [vmem:[%s1236_s28 + $0x8] sm:$0xff]  ;;  %s738_s20 = scalar_lea.sflag [#allocation4], %s1232_s4 }
  0x70   : > { %v235_v2 = vld [vmem:[%s1236_s28 + $0x10] sm:$0xff]  ;;  %v236_v3 = vld [vmem:[%s1236_s28 + $0x18] sm:$0xff]  ;;  %v237_v4 = vld [vmem:[%s1236_s28 + $0x20] sm:$0xff]  ;;  %p1826_p6 = scmp.ne.s32.totalorder %s1824_s21, 0 }
  0x71   : > { %s1254_s30 = scalar_lea.vmem [#allocation7], %s882_s25  ;;  %v238_v5 = vld [vmem:[%s1236_s28 + $0x28] sm:$0xff]  ;;  %v239_v6 = vld [vmem:[%s1236_s28 + $0x30] sm:$0xff]  ;;  %v240_v7 = vld [vmem:[%s1236_s28 + $0x38] sm:$0xff]  ;;  %s745_s3 = smul.u32 (%p1826_p6), 36, %s1105_s13 }
  0x72   : > { %449 = vst [vmem:[%s1254_s30] sm:$0xff] %v233_v0  ;;  %450 = vst [vmem:[%s1254_s30 + $0x8] sm:$0xff] %v234_v1  ;;  %v241_v8 = vld [vmem:[%s1236_s28 + $0x40] sm:$0xff]  ;;  %v242_v9 = vld [vmem:[%s1236_s28 + $0x48] sm:$0xff] }
  0x73   : > { %451 = vst [vmem:[%s1254_s30 + $0x10] sm:$0xff] %v235_v2  ;;  %452 = vst [vmem:[%s1254_s30 + $0x18] sm:$0xff] %v236_v3  ;;  %v243_v10 = vld [vmem:[%s1236_s28 + $0x50] sm:$0xff]  ;;  %v244_v11 = vld [vmem:[%s1236_s28 + $0x58] sm:$0xff]  ;;  %s746_s5 = ssub.s32 (%p1826_p6), 128, %s745_s3 }
  0x74   : > { %453 = vst [vmem:[%s1254_s30 + $0x20] sm:$0xff] %v237_v4  ;;  %454 = vst [vmem:[%s1254_s30 + $0x28] sm:$0xff] %v238_v5  ;;  %v245_v12 = vld [vmem:[%s1236_s28 + $0x60] sm:$0xff]  ;;  %v246_v13 = vld [vmem:[%s1236_s28 + $0x68] sm:$0xff]  ;;  %p747_p5 = scmp.lt.s32.totalorder (%p1826_p6), %s746_s5, 36 }
  0x75   : > { %455 = vst [vmem:[%s1254_s30 + $0x38] sm:$0xff] %v239_v6  ;;  %456 = vst [vmem:[%s1254_s30 + $0x40] sm:$0xff] %v240_v7  ;;  %v247_v14 = vld [vmem:[%s1236_s28 + $0x70] sm:$0xff]  ;;  %v248_v15 = vld [vmem:[%s1236_s28 + $0x78] sm:$0xff] }
  0x76   : > { %457 = vst [vmem:[%s1254_s30 + $0x48] sm:$0xff] %v241_v8  ;;  %458 = vst [vmem:[%s1254_s30 + $0x50] sm:$0xff] %v242_v9  ;;  %v249_v16 = vld [vmem:[%s1236_s28 + $0x80] sm:$0xff]  ;;  %v250_v17 = vld [vmem:[%s1236_s28 + $0x88] sm:$0xff] }
  0x77   : > { %459 = vst [vmem:[%s1254_s30 + $0x58] sm:$0xff] %v243_v10  ;;  %460 = vst [vmem:[%s1254_s30 + $0x60] sm:$0xff] %v244_v11  ;;  %v251_v18 = vld [vmem:[%s1236_s28 + $0x90] sm:$0xff]  ;;  %v252_v19 = vld [vmem:[%s1236_s28 + $0x98] sm:$0xff] }
  0x78   : > { %461 = vst [vmem:[%s1254_s30 + $0x70] sm:$0xff] %v245_v12  ;;  %462 = vst [vmem:[%s1254_s30 + $0x78] sm:$0xff] %v246_v13  ;;  %v253_v20 = vld [vmem:[%s1236_s28 + $0xa0] sm:$0xff]  ;;  %v254_v21 = vld [vmem:[%s1236_s28 + $0xa8] sm:$0xff] }
  0x79   : > { %463 = vst [vmem:[%s1254_s30 + $0x80] sm:$0xff] %v247_v14  ;;  %464 = vst [vmem:[%s1254_s30 + $0x88] sm:$0xff] %v248_v15  ;;  %v255_v22 = vld [vmem:[%s1236_s28 + $0xb0] sm:$0xff]  ;;  %v256_v23 = vld [vmem:[%s1236_s28 + $0xb8] sm:$0xff] }
  0x7a   : > { %465 = vst [vmem:[%s1254_s30 + $0x90] sm:$0xff] %v249_v16  ;;  %466 = vst [vmem:[%s1254_s30 + $0x98] sm:$0xff] %v250_v17  ;;  %v257_v24 = vld [vmem:[%s1236_s28 + $0xc0] sm:$0xff]  ;;  %v258_v25 = vld [vmem:[%s1236_s28 + $0xc8] sm:$0xff] }
  0x7b   : > { %467 = vst [vmem:[%s1254_s30 + $0xa8] sm:$0xff] %v251_v18  ;;  %468 = vst [vmem:[%s1254_s30 + $0xb0] sm:$0xff] %v252_v19  ;;  %v259_v26 = vld [vmem:[%s1236_s28 + $0xd0] sm:$0xff]  ;;  %v260_v27 = vld [vmem:[%s1236_s28 + $0xd8] sm:$0xff] }
  0x7c   : > { %469 = vst [vmem:[%s1254_s30 + $0xb8] sm:$0xff] %v253_v20  ;;  %470 = vst [vmem:[%s1254_s30 + $0xc0] sm:$0xff] %v254_v21  ;;  %v261_v28 = vld [vmem:[%s1236_s28 + $0xe0] sm:$0xff]  ;;  %v262_v29 = vld [vmem:[%s1236_s28 + $0xe8] sm:$0xff] }
  0x7d   : > { %471 = vst [vmem:[%s1254_s30 + $0xc8] sm:$0xff] %v255_v22  ;;  %472 = vst [vmem:[%s1254_s30 + $0xd0] sm:$0xff] %v256_v23  ;;  %v263_v30 = vld [vmem:[%s1236_s28 + $0xf0] sm:$0xff]  ;;  %v264_v31 = vld [vmem:[%s1236_s28 + $0xf8] sm:$0xff] }
  0x7e   : > { %473 = vst [vmem:[%s1254_s30 + $0xe0] sm:$0xff] %v257_v24  ;;  %474 = vst [vmem:[%s1254_s30 + $0xe8] sm:$0xff] %v258_v25  ;;  %v265_v32 = vld [vmem:[%s1236_s28 + $0x100] sm:$0xff]  ;;  %v266_v33 = vld [vmem:[%s1236_s28 + $0x108] sm:$0xff] }
  0x7f   : > { %475 = vst [vmem:[%s1254_s30 + $0xf0] sm:$0xff] %v259_v26  ;;  %476 = vst [vmem:[%s1254_s30 + $0xf8] sm:$0xff] %v260_v27  ;;  %v267_v34 = vld [vmem:[%s1236_s28 + $0x110] sm:$0xff]  ;;  %v268_v35 = vld [vmem:[%s1236_s28 + $0x118] sm:$0xff] }
  0x80   : > { %477 = vst [vmem:[%s1254_s30 + $0x100] sm:$0xff] %v261_v28  ;;  %478 = vst [vmem:[%s1254_s30 + $0x108] sm:$0xff] %v262_v29  ;;  %v269_v36 = vld [vmem:[%s1236_s28 + $0x120] sm:$0xff]  ;;  %v270_v37 = vld [vmem:[%s1236_s28 + $0x128] sm:$0xff] }
  0x81   : > { %479 = vst [vmem:[%s1254_s30 + $0x118] sm:$0xff] %v263_v30  ;;  %480 = vst [vmem:[%s1254_s30 + $0x120] sm:$0xff] %v264_v31  ;;  %v271_v38 = vld [vmem:[%s1236_s28 + $0x130] sm:$0xff]  ;;  %v272_v39 = vld [vmem:[%s1236_s28 + $0x138] sm:$0xff] }
  0x82   : > { %481 = vst [vmem:[%s1254_s30 + $0x128] sm:$0xff] %v265_v32  ;;  %482 = vst [vmem:[%s1254_s30 + $0x130] sm:$0xff] %v266_v33  ;;  %v273_v40 = vld [vmem:[%s1236_s28 + $0x140] sm:$0xff]  ;;  %v274_v41 = vld [vmem:[%s1236_s28 + $0x148] sm:$0xff] }
  0x83   : > { %483 = vst [vmem:[%s1254_s30 + $0x138] sm:$0xff] %v267_v34  ;;  %484 = vst [vmem:[%s1254_s30 + $0x140] sm:$0xff] %v268_v35  ;;  %v275_v42 = vld [vmem:[%s1236_s28 + $0x150] sm:$0xff]  ;;  %v276_v43 = vld [vmem:[%s1236_s28 + $0x158] sm:$0xff] }
  0x84   : > { %485 = vst [vmem:[%s1254_s30 + $0x150] sm:$0xff] %v269_v36  ;;  %486 = vst [vmem:[%s1254_s30 + $0x158] sm:$0xff] %v270_v37  ;;  %v277_v44 = vld [vmem:[%s1236_s28 + $0x160] sm:$0xff]  ;;  %v278_v45 = vld [vmem:[%s1236_s28 + $0x168] sm:$0xff] }
  0x85   : > { %487 = vst [vmem:[%s1254_s30 + $0x160] sm:$0xff] %v271_v38  ;;  %488 = vst [vmem:[%s1254_s30 + $0x168] sm:$0xff] %v272_v39  ;;  %v279_v46 = vld [vmem:[%s1236_s28 + $0x170] sm:$0xff]  ;;  %v280_v47 = vld [vmem:[%s1236_s28 + $0x178] sm:$0xff] }
  0x86   : > { %489 = vst [vmem:[%s1254_s30 + $0x170] sm:$0xff] %v273_v40  ;;  %490 = vst [vmem:[%s1254_s30 + $0x178] sm:$0xff] %v274_v41  ;;  %v281_v48 = vld [vmem:[%s1236_s28 + $0x180] sm:$0xff]  ;;  %v282_v49 = vld [vmem:[%s1236_s28 + $0x188] sm:$0xff] }
  0x87   : > { %491 = vst [vmem:[%s1254_s30 + $0x188] sm:$0xff] %v275_v42  ;;  %492 = vst [vmem:[%s1254_s30 + $0x190] sm:$0xff] %v276_v43  ;;  %v283_v50 = vld [vmem:[%s1236_s28 + $0x190] sm:$0xff]  ;;  %v284_v51 = vld [vmem:[%s1236_s28 + $0x198] sm:$0xff] }
  0x88   : > { %493 = vst [vmem:[%s1254_s30 + $0x198] sm:$0xff] %v277_v44  ;;  %494 = vst [vmem:[%s1254_s30 + $0x1a0] sm:$0xff] %v278_v45  ;;  %v285_v52 = vld [vmem:[%s1236_s28 + $0x1a0] sm:$0xff]  ;;  %v286_v53 = vld [vmem:[%s1236_s28 + $0x1a8] sm:$0xff] }
  0x89   : > { %495 = vst [vmem:[%s1254_s30 + $0x1a8] sm:$0xff] %v279_v46  ;;  %496 = vst [vmem:[%s1254_s30 + $0x1b0] sm:$0xff] %v280_v47  ;;  %v287_v54 = vld [vmem:[%s1236_s28 + $0x1b0] sm:$0xff]  ;;  %v288_v55 = vld [vmem:[%s1236_s28 + $0x1b8] sm:$0xff] }
  0x8a   : > { %497 = vst [vmem:[%s1254_s30 + $0x1c0] sm:$0xff] %v281_v48  ;;  %498 = vst [vmem:[%s1254_s30 + $0x1c8] sm:$0xff] %v282_v49  ;;  %v289_v56 = vld [vmem:[%s1236_s28 + $0x1c0] sm:$0xff]  ;;  %v290_v57 = vld [vmem:[%s1236_s28 + $0x1c8] sm:$0xff] }
  0x8b   : > { %499 = vst [vmem:[%s1254_s30 + $0x1d0] sm:$0xff] %v283_v50  ;;  %500 = vst [vmem:[%s1254_s30 + $0x1d8] sm:$0xff] %v284_v51  ;;  %v291_v58 = vld [vmem:[%s1236_s28 + $0x1d0] sm:$0xff]  ;;  %v292_v59 = vld [vmem:[%s1236_s28 + $0x1d8] sm:$0xff] }
  0x8c   : > { %501 = vst [vmem:[%s1254_s30 + $0x1e0] sm:$0xff] %v285_v52  ;;  %502 = vst [vmem:[%s1254_s30 + $0x1e8] sm:$0xff] %v286_v53  ;;  %v293_v60 = vld [vmem:[%s1236_s28 + $0x1e0] sm:$0xff]  ;;  %v294_v61 = vld [vmem:[%s1236_s28 + $0x1e8] sm:$0xff] }
  0x8d   : > { %503 = vst [vmem:[%s1254_s30 + $0x1f8] sm:$0xff] %v287_v54  ;;  %504 = vst [vmem:[%s1254_s30 + $0x200] sm:$0xff] %v288_v55  ;;  %v295_v62 = vld [vmem:[%s1236_s28 + $0x1f0] sm:$0xff]  ;;  %v296_v63 = vld [vmem:[%s1236_s28 + $0x1f8] sm:$0xff] }
  0x8e   : > { %505 = vst [vmem:[%s1254_s30 + $0x208] sm:$0xff] %v289_v56  ;;  %506 = vst [vmem:[%s1254_s30 + $0x210] sm:$0xff] %v290_v57  ;;  %v297_v0 = vld [vmem:[%s1236_s28 + $0x200] sm:$0xff]  ;;  %v298_v1 = vld [vmem:[%s1236_s28 + $0x208] sm:$0xff] }
  0x8f   : > { %507 = vst [vmem:[%s1254_s30 + $0x218] sm:$0xff] %v291_v58  ;;  %508 = vst [vmem:[%s1254_s30 + $0x220] sm:$0xff] %v292_v59  ;;  %v299_v2 = vld [vmem:[%s1236_s28 + $0x210] sm:$0xff]  ;;  %v300_v3 = vld [vmem:[%s1236_s28 + $0x218] sm:$0xff] }
  0x90   : > { %509 = vst [vmem:[%s1254_s30 + $0x230] sm:$0xff] %v293_v60  ;;  %510 = vst [vmem:[%s1254_s30 + $0x238] sm:$0xff] %v294_v61  ;;  %v301_v4 = vld [vmem:[%s1236_s28 + $0x220] sm:$0xff]  ;;  %v302_v5 = vld [vmem:[%s1236_s28 + $0x228] sm:$0xff] }
  0x91   : > { %511 = vst [vmem:[%s1254_s30 + $0x240] sm:$0xff] %v295_v62  ;;  %512 = vst [vmem:[%s1254_s30 + $0x248] sm:$0xff] %v296_v63  ;;  %v303_v6 = vld [vmem:[%s1236_s28 + $0x230] sm:$0xff]  ;;  %v304_v7 = vld [vmem:[%s1236_s28 + $0x238] sm:$0xff] }
  0x92   : > { %513 = vst [vmem:[%s1254_s30 + $0x250] sm:$0xff] %v297_v0  ;;  %514 = vst [vmem:[%s1254_s30 + $0x258] sm:$0xff] %v298_v1  ;;  %v305_v8 = vld [vmem:[%s1236_s28 + $0x240] sm:$0xff]  ;;  %v306_v9 = vld [vmem:[%s1236_s28 + $0x248] sm:$0xff] }
  0x93   : > { %515 = vst [vmem:[%s1254_s30 + $0x268] sm:$0xff] %v299_v2  ;;  %516 = vst [vmem:[%s1254_s30 + $0x270] sm:$0xff] %v300_v3  ;;  %v307_v10 = vld [vmem:[%s1236_s28 + $0x250] sm:$0xff]  ;;  %v308_v11 = vld [vmem:[%s1236_s28 + $0x258] sm:$0xff] }
  0x94   : > { %517 = vst [vmem:[%s1254_s30 + $0x278] sm:$0xff] %v301_v4  ;;  %518 = vst [vmem:[%s1254_s30 + $0x280] sm:$0xff] %v302_v5  ;;  %v309_v12 = vld [vmem:[%s1236_s28 + $0x260] sm:$0xff]  ;;  %v310_v13 = vld [vmem:[%s1236_s28 + $0x268] sm:$0xff] }
  0x95   : > { %519 = vst [vmem:[%s1254_s30 + $0x288] sm:$0xff] %v303_v6  ;;  %520 = vst [vmem:[%s1254_s30 + $0x290] sm:$0xff] %v304_v7  ;;  %v311_v14 = vld [vmem:[%s1236_s28 + $0x270] sm:$0xff]  ;;  %v312_v15 = vld [vmem:[%s1236_s28 + $0x278] sm:$0xff] }
  0x96   : > { %521 = vst [vmem:[%s1254_s30 + $0x2a0] sm:$0xff] %v305_v8  ;;  %522 = vst [vmem:[%s1254_s30 + $0x2a8] sm:$0xff] %v306_v9  ;;  %v313_v16 = vld [vmem:[%s1236_s28 + $0x280] sm:$0xff]  ;;  %v314_v17 = vld [vmem:[%s1236_s28 + $0x288] sm:$0xff] }
  0x97   : > { %523 = vst [vmem:[%s1254_s30 + $0x2b0] sm:$0xff] %v307_v10  ;;  %524 = vst [vmem:[%s1254_s30 + $0x2b8] sm:$0xff] %v308_v11  ;;  %v315_v18 = vld [vmem:[%s1236_s28 + $0x290] sm:$0xff]  ;;  %v316_v19 = vld [vmem:[%s1236_s28 + $0x298] sm:$0xff] }
  0x98   : > { %525 = vst [vmem:[%s1254_s30 + $0x2c0] sm:$0xff] %v309_v12  ;;  %526 = vst [vmem:[%s1254_s30 + $0x2c8] sm:$0xff] %v310_v13  ;;  %v317_v20 = vld [vmem:[%s1236_s28 + $0x2a0] sm:$0xff]  ;;  %v318_v21 = vld [vmem:[%s1236_s28 + $0x2a8] sm:$0xff] }
  0x99   : > { %527 = vst [vmem:[%s1254_s30 + $0x2d8] sm:$0xff] %v311_v14  ;;  %528 = vst [vmem:[%s1254_s30 + $0x2e0] sm:$0xff] %v312_v15  ;;  %v319_v22 = vld [vmem:[%s1236_s28 + $0x2b0] sm:$0xff]  ;;  %v320_v23 = vld [vmem:[%s1236_s28 + $0x2b8] sm:$0xff] }
  0x9a   : > { %529 = vst [vmem:[%s1254_s30 + $0x2e8] sm:$0xff] %v313_v16  ;;  %530 = vst [vmem:[%s1254_s30 + $0x2f0] sm:$0xff] %v314_v17  ;;  %v321_v24 = vld [vmem:[%s1236_s28 + $0x2c0] sm:$0xff]  ;;  %v322_v25 = vld [vmem:[%s1236_s28 + $0x2c8] sm:$0xff] }
  0x9b   : > { %531 = vst [vmem:[%s1254_s30 + $0x2f8] sm:$0xff] %v315_v18  ;;  %532 = vst [vmem:[%s1254_s30 + $0x300] sm:$0xff] %v316_v19  ;;  %v323_v26 = vld [vmem:[%s1236_s28 + $0x2d0] sm:$0xff]  ;;  %v324_v27 = vld [vmem:[%s1236_s28 + $0x2d8] sm:$0xff] }
  0x9c   : > { %533 = vst [vmem:[%s1254_s30 + $0x310] sm:$0xff] %v317_v20  ;;  %534 = vst [vmem:[%s1254_s30 + $0x318] sm:$0xff] %v318_v21  ;;  %v325_v28 = vld [vmem:[%s1236_s28 + $0x2e0] sm:$0xff]  ;;  %v326_v29 = vld [vmem:[%s1236_s28 + $0x2e8] sm:$0xff] }
  0x9d   : > { %535 = vst [vmem:[%s1254_s30 + $0x320] sm:$0xff] %v319_v22  ;;  %536 = vst [vmem:[%s1254_s30 + $0x328] sm:$0xff] %v320_v23  ;;  %v327_v30 = vld [vmem:[%s1236_s28 + $0x2f0] sm:$0xff]  ;;  %v328_v31 = vld [vmem:[%s1236_s28 + $0x2f8] sm:$0xff] }
  0x9e   : > { %537 = vst [vmem:[%s1254_s30 + $0x330] sm:$0xff] %v321_v24  ;;  %538 = vst [vmem:[%s1254_s30 + $0x338] sm:$0xff] %v322_v25  ;;  %v329_v32 = vld [vmem:[%s1236_s28 + $0x300] sm:$0xff]  ;;  %v330_v33 = vld [vmem:[%s1236_s28 + $0x308] sm:$0xff] }
  0x9f   : > { %539 = vst [vmem:[%s1254_s30 + $0x348] sm:$0xff] %v323_v26  ;;  %540 = vst [vmem:[%s1254_s30 + $0x350] sm:$0xff] %v324_v27  ;;  %v331_v34 = vld [vmem:[%s1236_s28 + $0x310] sm:$0xff]  ;;  %v332_v35 = vld [vmem:[%s1236_s28 + $0x318] sm:$0xff] }
  0xa0   : > { %541 = vst [vmem:[%s1254_s30 + $0x358] sm:$0xff] %v325_v28  ;;  %542 = vst [vmem:[%s1254_s30 + $0x360] sm:$0xff] %v326_v29  ;;  %v333_v36 = vld [vmem:[%s1236_s28 + $0x320] sm:$0xff]  ;;  %v334_v37 = vld [vmem:[%s1236_s28 + $0x328] sm:$0xff] }
  0xa1   : > { %543 = vst [vmem:[%s1254_s30 + $0x368] sm:$0xff] %v327_v30  ;;  %544 = vst [vmem:[%s1254_s30 + $0x370] sm:$0xff] %v328_v31  ;;  %v335_v38 = vld [vmem:[%s1236_s28 + $0x330] sm:$0xff]  ;;  %v336_v39 = vld [vmem:[%s1236_s28 + $0x338] sm:$0xff] }
  0xa2   : > { %545 = vst [vmem:[%s1254_s30 + $0x380] sm:$0xff] %v329_v32  ;;  %546 = vst [vmem:[%s1254_s30 + $0x388] sm:$0xff] %v330_v33  ;;  %v337_v40 = vld [vmem:[%s1236_s28 + $0x340] sm:$0xff]  ;;  %v338_v41 = vld [vmem:[%s1236_s28 + $0x348] sm:$0xff] }
  0xa3   : > { %547 = vst [vmem:[%s1254_s30 + $0x390] sm:$0xff] %v331_v34  ;;  %548 = vst [vmem:[%s1254_s30 + $0x398] sm:$0xff] %v332_v35  ;;  %v339_v42 = vld [vmem:[%s1236_s28 + $0x350] sm:$0xff]  ;;  %v340_v43 = vld [vmem:[%s1236_s28 + $0x358] sm:$0xff] }
  0xa4   : > { %549 = vst [vmem:[%s1254_s30 + $0x3a0] sm:$0xff] %v333_v36  ;;  %550 = vst [vmem:[%s1254_s30 + $0x3a8] sm:$0xff] %v334_v37  ;;  %v341_v44 = vld [vmem:[%s1236_s28 + $0x360] sm:$0xff]  ;;  %v342_v45 = vld [vmem:[%s1236_s28 + $0x368] sm:$0xff] }
  0xa5   : > { %551 = vst [vmem:[%s1254_s30 + $0x3b8] sm:$0xff] %v335_v38  ;;  %552 = vst [vmem:[%s1254_s30 + $0x3c0] sm:$0xff] %v336_v39  ;;  %v343_v46 = vld [vmem:[%s1236_s28 + $0x370] sm:$0xff]  ;;  %v344_v47 = vld [vmem:[%s1236_s28 + $0x378] sm:$0xff] }
  0xa6   : > { %553 = vst [vmem:[%s1254_s30 + $0x3c8] sm:$0xff] %v337_v40  ;;  %554 = vst [vmem:[%s1254_s30 + $0x3d0] sm:$0xff] %v338_v41  ;;  %v345_v48 = vld [vmem:[%s1236_s28 + $0x380] sm:$0xff]  ;;  %v346_v49 = vld [vmem:[%s1236_s28 + $0x388] sm:$0xff] }
  0xa7   : > { %555 = vst [vmem:[%s1254_s30 + $0x3d8] sm:$0xff] %v339_v42  ;;  %556 = vst [vmem:[%s1254_s30 + $0x3e0] sm:$0xff] %v340_v43  ;;  %v347_v50 = vld [vmem:[%s1236_s28 + $0x390] sm:$0xff]  ;;  %v348_v51 = vld [vmem:[%s1236_s28 + $0x398] sm:$0xff] }
  0xa8   : > { %557 = vst [vmem:[%s1254_s30 + $0x3f0] sm:$0xff] %v341_v44  ;;  %558 = vst [vmem:[%s1254_s30 + $0x3f8] sm:$0xff] %v342_v45  ;;  %v349_v52 = vld [vmem:[%s1236_s28 + $0x3a0] sm:$0xff]  ;;  %v350_v53 = vld [vmem:[%s1236_s28 + $0x3a8] sm:$0xff] }
  0xa9   : > { %559 = vst [vmem:[%s1254_s30 + $0x400] sm:$0xff] %v343_v46  ;;  %560 = vst [vmem:[%s1254_s30 + $0x408] sm:$0xff] %v344_v47  ;;  %v351_v54 = vld [vmem:[%s1236_s28 + $0x3b0] sm:$0xff]  ;;  %v352_v55 = vld [vmem:[%s1236_s28 + $0x3b8] sm:$0xff] }
  0xaa   : > { %561 = vst [vmem:[%s1254_s30 + $0x410] sm:$0xff] %v345_v48  ;;  %562 = vst [vmem:[%s1254_s30 + $0x418] sm:$0xff] %v346_v49  ;;  %v353_v56 = vld [vmem:[%s1236_s28 + $0x3c0] sm:$0xff]  ;;  %v354_v57 = vld [vmem:[%s1236_s28 + $0x3c8] sm:$0xff] }
  0xab   : > { %563 = vst [vmem:[%s1254_s30 + $0x428] sm:$0xff] %v347_v50  ;;  %564 = vst [vmem:[%s1254_s30 + $0x430] sm:$0xff] %v348_v51  ;;  %v355_v58 = vld [vmem:[%s1236_s28 + $0x3d0] sm:$0xff]  ;;  %v356_v59 = vld [vmem:[%s1236_s28 + $0x3d8] sm:$0xff] }
  0xac   : > { %565 = vst [vmem:[%s1254_s30 + $0x438] sm:$0xff] %v349_v52  ;;  %566 = vst [vmem:[%s1254_s30 + $0x440] sm:$0xff] %v350_v53  ;;  %v357_v60 = vld [vmem:[%s1236_s28 + $0x3e0] sm:$0xff]  ;;  %v358_v61 = vld [vmem:[%s1236_s28 + $0x3e8] sm:$0xff] }
  0xad   : > { %567 = vst [vmem:[%s1254_s30 + $0x448] sm:$0xff] %v351_v54  ;;  %568 = vst [vmem:[%s1254_s30 + $0x450] sm:$0xff] %v352_v55  ;;  %v359_v62 = vld [vmem:[%s1236_s28 + $0x3f0] sm:$0xff]  ;;  %v360_v63 = vld [vmem:[%s1236_s28 + $0x3f8] sm:$0xff] }
  0xae   : > { %569 = vst [vmem:[%s1254_s30 + $0x460] sm:$0xff] %v353_v56  ;;  %570 = vst [vmem:[%s1254_s30 + $0x468] sm:$0xff] %v354_v57  ;;  %v361_v0 = vld [vmem:[%s1236_s28 + $0x400] sm:$0xff]  ;;  %v362_v1 = vld [vmem:[%s1236_s28 + $0x408] sm:$0xff] }
  0xaf   : > { %571 = vst [vmem:[%s1254_s30 + $0x470] sm:$0xff] %v355_v58  ;;  %572 = vst [vmem:[%s1254_s30 + $0x478] sm:$0xff] %v356_v59  ;;  %v363_v2 = vld [vmem:[%s1236_s28 + $0x410] sm:$0xff]  ;;  %v364_v3 = vld [vmem:[%s1236_s28 + $0x418] sm:$0xff] }
  0xb0   : > { %573 = vst [vmem:[%s1254_s30 + $0x480] sm:$0xff] %v357_v60  ;;  %574 = vst [vmem:[%s1254_s30 + $0x488] sm:$0xff] %v358_v61  ;;  %v365_v4 = vld [vmem:[%s1236_s28 + $0x420] sm:$0xff]  ;;  %v366_v5 = vld [vmem:[%s1236_s28 + $0x428] sm:$0xff] }
  0xb1   : > { %575 = vst [vmem:[%s1254_s30 + $0x498] sm:$0xff] %v359_v62  ;;  %576 = vst [vmem:[%s1254_s30 + $0x4a0] sm:$0xff] %v360_v63  ;;  %v367_v6 = vld [vmem:[%s1236_s28 + $0x430] sm:$0xff]  ;;  %v368_v7 = vld [vmem:[%s1236_s28 + $0x438] sm:$0xff] }
  0xb2   : > { %577 = vst [vmem:[%s1254_s30 + $0x4a8] sm:$0xff] %v361_v0  ;;  %578 = vst [vmem:[%s1254_s30 + $0x4b0] sm:$0xff] %v362_v1  ;;  %v369_v8 = vld [vmem:[%s1236_s28 + $0x440] sm:$0xff]  ;;  %v370_v9 = vld [vmem:[%s1236_s28 + $0x448] sm:$0xff] }
  0xb3   : > { %579 = vst [vmem:[%s1254_s30 + $0x4b8] sm:$0xff] %v363_v2  ;;  %580 = vst [vmem:[%s1254_s30 + $0x4c0] sm:$0xff] %v364_v3  ;;  %v371_v10 = vld [vmem:[%s1236_s28 + $0x450] sm:$0xff]  ;;  %v372_v11 = vld [vmem:[%s1236_s28 + $0x458] sm:$0xff] }
  0xb4   : > { %581 = vst [vmem:[%s1254_s30 + $0x4d0] sm:$0xff] %v365_v4  ;;  %582 = vst [vmem:[%s1254_s30 + $0x4d8] sm:$0xff] %v366_v5  ;;  %v373_v12 = vld [vmem:[%s1236_s28 + $0x460] sm:$0xff]  ;;  %v374_v13 = vld [vmem:[%s1236_s28 + $0x468] sm:$0xff] }
  0xb5   : > { %583 = vst [vmem:[%s1254_s30 + $0x4e0] sm:$0xff] %v367_v6  ;;  %584 = vst [vmem:[%s1254_s30 + $0x4e8] sm:$0xff] %v368_v7  ;;  %v375_v14 = vld [vmem:[%s1236_s28 + $0x470] sm:$0xff]  ;;  %v376_v15 = vld [vmem:[%s1236_s28 + $0x478] sm:$0xff] }
  0xb6   : > { %585 = vst [vmem:[%s1254_s30 + $0x4f0] sm:$0xff] %v369_v8  ;;  %586 = vst [vmem:[%s1254_s30 + $0x4f8] sm:$0xff] %v370_v9  ;;  %v377_v16 = vld [vmem:[%s1236_s28 + $0x480] sm:$0xff]  ;;  %v378_v17 = vld [vmem:[%s1236_s28 + $0x488] sm:$0xff] }
  0xb7   : > { %587 = vst [vmem:[%s1254_s30 + $0x508] sm:$0xff] %v371_v10  ;;  %588 = vst [vmem:[%s1254_s30 + $0x510] sm:$0xff] %v372_v11  ;;  %v379_v18 = vld [vmem:[%s1236_s28 + $0x490] sm:$0xff]  ;;  %v380_v19 = vld [vmem:[%s1236_s28 + $0x498] sm:$0xff] }
  0xb8   : > { %589 = vst [vmem:[%s1254_s30 + $0x518] sm:$0xff] %v373_v12  ;;  %590 = vst [vmem:[%s1254_s30 + $0x520] sm:$0xff] %v374_v13  ;;  %v381_v20 = vld [vmem:[%s1236_s28 + $0x4a0] sm:$0xff]  ;;  %v382_v21 = vld [vmem:[%s1236_s28 + $0x4a8] sm:$0xff] }
  0xb9   : > { %591 = vst [vmem:[%s1254_s30 + $0x528] sm:$0xff] %v375_v14  ;;  %592 = vst [vmem:[%s1254_s30 + $0x530] sm:$0xff] %v376_v15  ;;  %v383_v22 = vld [vmem:[%s1236_s28 + $0x4b0] sm:$0xff]  ;;  %v384_v23 = vld [vmem:[%s1236_s28 + $0x4b8] sm:$0xff] }
  0xba   : > { %593 = vst [vmem:[%s1254_s30 + $0x540] sm:$0xff] %v377_v16  ;;  %594 = vst [vmem:[%s1254_s30 + $0x548] sm:$0xff] %v378_v17  ;;  %v385_v24 = vld [vmem:[%s1236_s28 + $0x4c0] sm:$0xff]  ;;  %v386_v25 = vld [vmem:[%s1236_s28 + $0x4c8] sm:$0xff] }
  0xbb   : > { %595 = vst [vmem:[%s1254_s30 + $0x550] sm:$0xff] %v379_v18  ;;  %596 = vst [vmem:[%s1254_s30 + $0x558] sm:$0xff] %v380_v19  ;;  %v387_v26 = vld [vmem:[%s1236_s28 + $0x4d0] sm:$0xff]  ;;  %v388_v27 = vld [vmem:[%s1236_s28 + $0x4d8] sm:$0xff] }
  0xbc   : > { %597 = vst [vmem:[%s1254_s30 + $0x560] sm:$0xff] %v381_v20  ;;  %598 = vst [vmem:[%s1254_s30 + $0x568] sm:$0xff] %v382_v21  ;;  %v389_v28 = vld [vmem:[%s1236_s28 + $0x4e0] sm:$0xff]  ;;  %v390_v29 = vld [vmem:[%s1236_s28 + $0x4e8] sm:$0xff] }
  0xbd   : > { %599 = vst [vmem:[%s1254_s30 + $0x578] sm:$0xff] %v383_v22  ;;  %600 = vst [vmem:[%s1254_s30 + $0x580] sm:$0xff] %v384_v23  ;;  %v391_v30 = vld [vmem:[%s1236_s28 + $0x4f0] sm:$0xff]  ;;  %v392_v31 = vld [vmem:[%s1236_s28 + $0x4f8] sm:$0xff] }
  0xbe   : > { %601 = vst [vmem:[%s1254_s30 + $0x588] sm:$0xff] %v385_v24  ;;  %602 = vst [vmem:[%s1254_s30 + $0x590] sm:$0xff] %v386_v25  ;;  %v393_v32 = vld [vmem:[%s1236_s28 + $0x500] sm:$0xff]  ;;  %v394_v33 = vld [vmem:[%s1236_s28 + $0x508] sm:$0xff] }
  0xbf   : > { %603 = vst [vmem:[%s1254_s30 + $0x598] sm:$0xff] %v387_v26  ;;  %604 = vst [vmem:[%s1254_s30 + $0x5a0] sm:$0xff] %v388_v27  ;;  %v395_v34 = vld [vmem:[%s1236_s28 + $0x510] sm:$0xff]  ;;  %v396_v35 = vld [vmem:[%s1236_s28 + $0x518] sm:$0xff] }
  0xc0   : > { %605 = vst [vmem:[%s1254_s30 + $0x5b0] sm:$0xff] %v389_v28  ;;  %606 = vst [vmem:[%s1254_s30 + $0x5b8] sm:$0xff] %v390_v29  ;;  %v397_v36 = vld [vmem:[%s1236_s28 + $0x520] sm:$0xff]  ;;  %v398_v37 = vld [vmem:[%s1236_s28 + $0x528] sm:$0xff] }
  0xc1   : > { %607 = vst [vmem:[%s1254_s30 + $0x5c0] sm:$0xff] %v391_v30  ;;  %608 = vst [vmem:[%s1254_s30 + $0x5c8] sm:$0xff] %v392_v31  ;;  %v399_v38 = vld [vmem:[%s1236_s28 + $0x530] sm:$0xff]  ;;  %v400_v39 = vld [vmem:[%s1236_s28 + $0x538] sm:$0xff] }
  0xc2   : > { %609 = vst [vmem:[%s1254_s30 + $0x5d0] sm:$0xff] %v393_v32  ;;  %610 = vst [vmem:[%s1254_s30 + $0x5d8] sm:$0xff] %v394_v33  ;;  %v401_v40 = vld [vmem:[%s1236_s28 + $0x540] sm:$0xff]  ;;  %v402_v41 = vld [vmem:[%s1236_s28 + $0x548] sm:$0xff] }
  0xc3   : > { %611 = vst [vmem:[%s1254_s30 + $0x5e8] sm:$0xff] %v395_v34  ;;  %612 = vst [vmem:[%s1254_s30 + $0x5f0] sm:$0xff] %v396_v35  ;;  %v403_v42 = vld [vmem:[%s1236_s28 + $0x550] sm:$0xff]  ;;  %v404_v43 = vld [vmem:[%s1236_s28 + $0x558] sm:$0xff] }
  0xc4   : > { %613 = vst [vmem:[%s1254_s30 + $0x5f8] sm:$0xff] %v397_v36  ;;  %614 = vst [vmem:[%s1254_s30 + $0x600] sm:$0xff] %v398_v37  ;;  %v405_v44 = vld [vmem:[%s1236_s28 + $0x560] sm:$0xff]  ;;  %v406_v45 = vld [vmem:[%s1236_s28 + $0x568] sm:$0xff] }
  0xc5   : > { %615 = vst [vmem:[%s1254_s30 + $0x608] sm:$0xff] %v399_v38  ;;  %616 = vst [vmem:[%s1254_s30 + $0x610] sm:$0xff] %v400_v39  ;;  %v407_v46 = vld [vmem:[%s1236_s28 + $0x570] sm:$0xff]  ;;  %v408_v47 = vld [vmem:[%s1236_s28 + $0x578] sm:$0xff] }
  0xc6   : > { %617 = vst [vmem:[%s1254_s30 + $0x620] sm:$0xff] %v401_v40  ;;  %618 = vst [vmem:[%s1254_s30 + $0x628] sm:$0xff] %v402_v41  ;;  %v409_v48 = vld [vmem:[%s1236_s28 + $0x580] sm:$0xff]  ;;  %v410_v49 = vld [vmem:[%s1236_s28 + $0x588] sm:$0xff] }
  0xc7   : > { %619 = vst [vmem:[%s1254_s30 + $0x630] sm:$0xff] %v403_v42  ;;  %620 = vst [vmem:[%s1254_s30 + $0x638] sm:$0xff] %v404_v43  ;;  %v411_v50 = vld [vmem:[%s1236_s28 + $0x590] sm:$0xff]  ;;  %v412_v51 = vld [vmem:[%s1236_s28 + $0x598] sm:$0xff] }
  0xc8   : > { %621 = vst [vmem:[%s1254_s30 + $0x640] sm:$0xff] %v405_v44  ;;  %622 = vst [vmem:[%s1254_s30 + $0x648] sm:$0xff] %v406_v45  ;;  %v413_v52 = vld [vmem:[%s1236_s28 + $0x5a0] sm:$0xff]  ;;  %v414_v53 = vld [vmem:[%s1236_s28 + $0x5a8] sm:$0xff] }
  0xc9   : > { %623 = vst [vmem:[%s1254_s30 + $0x658] sm:$0xff] %v407_v46  ;;  %624 = vst [vmem:[%s1254_s30 + $0x660] sm:$0xff] %v408_v47  ;;  %v415_v54 = vld [vmem:[%s1236_s28 + $0x5b0] sm:$0xff]  ;;  %v416_v55 = vld [vmem:[%s1236_s28 + $0x5b8] sm:$0xff] }
  0xca   : > { %625 = vst [vmem:[%s1254_s30 + $0x668] sm:$0xff] %v409_v48  ;;  %626 = vst [vmem:[%s1254_s30 + $0x670] sm:$0xff] %v410_v49  ;;  %v417_v56 = vld [vmem:[%s1236_s28 + $0x5c0] sm:$0xff]  ;;  %v418_v57 = vld [vmem:[%s1236_s28 + $0x5c8] sm:$0xff] }
  0xcb   : > { %627 = vst [vmem:[%s1254_s30 + $0x678] sm:$0xff] %v411_v50  ;;  %628 = vst [vmem:[%s1254_s30 + $0x680] sm:$0xff] %v412_v51  ;;  %v419_v58 = vld [vmem:[%s1236_s28 + $0x5d0] sm:$0xff]  ;;  %v420_v59 = vld [vmem:[%s1236_s28 + $0x5d8] sm:$0xff] }
  0xcc   : > { %629 = vst [vmem:[%s1254_s30 + $0x690] sm:$0xff] %v413_v52  ;;  %630 = vst [vmem:[%s1254_s30 + $0x698] sm:$0xff] %v414_v53  ;;  %v421_v60 = vld [vmem:[%s1236_s28 + $0x5e0] sm:$0xff]  ;;  %v422_v61 = vld [vmem:[%s1236_s28 + $0x5e8] sm:$0xff] }
  0xcd   : > { %631 = vst [vmem:[%s1254_s30 + $0x6a0] sm:$0xff] %v415_v54  ;;  %632 = vst [vmem:[%s1254_s30 + $0x6a8] sm:$0xff] %v416_v55  ;;  %v423_v62 = vld [vmem:[%s1236_s28 + $0x5f0] sm:$0xff]  ;;  %v424_v63 = vld [vmem:[%s1236_s28 + $0x5f8] sm:$0xff] }
  0xce   : > { %633 = vst [vmem:[%s1254_s30 + $0x6b0] sm:$0xff] %v417_v56  ;;  %634 = vst [vmem:[%s1254_s30 + $0x6b8] sm:$0xff] %v418_v57  ;;  %v425_v0 = vld [vmem:[%s1236_s28 + $0x600] sm:$0xff]  ;;  %v426_v1 = vld [vmem:[%s1236_s28 + $0x608] sm:$0xff] }
  0xcf   : > { %635 = vst [vmem:[%s1254_s30 + $0x6c8] sm:$0xff] %v419_v58  ;;  %636 = vst [vmem:[%s1254_s30 + $0x6d0] sm:$0xff] %v420_v59  ;;  %v427_v2 = vld [vmem:[%s1236_s28 + $0x610] sm:$0xff]  ;;  %v428_v3 = vld [vmem:[%s1236_s28 + $0x618] sm:$0xff] }
  0xd0   : > { %637 = vst [vmem:[%s1254_s30 + $0x6d8] sm:$0xff] %v421_v60  ;;  %638 = vst [vmem:[%s1254_s30 + $0x6e0] sm:$0xff] %v422_v61  ;;  %v429_v4 = vld [vmem:[%s1236_s28 + $0x620] sm:$0xff]  ;;  %v430_v5 = vld [vmem:[%s1236_s28 + $0x628] sm:$0xff] }
  0xd1   : > { %639 = vst [vmem:[%s1254_s30 + $0x6e8] sm:$0xff] %v423_v62  ;;  %640 = vst [vmem:[%s1254_s30 + $0x6f0] sm:$0xff] %v424_v63  ;;  %v431_v6 = vld [vmem:[%s1236_s28 + $0x630] sm:$0xff]  ;;  %v432_v7 = vld [vmem:[%s1236_s28 + $0x638] sm:$0xff] }
  0xd2   : > { %641 = vst [vmem:[%s1254_s30 + $0x700] sm:$0xff] %v425_v0  ;;  %642 = vst [vmem:[%s1254_s30 + $0x708] sm:$0xff] %v426_v1  ;;  %v433_v8 = vld [vmem:[%s1236_s28 + $0x640] sm:$0xff]  ;;  %v434_v9 = vld [vmem:[%s1236_s28 + $0x648] sm:$0xff] }
  0xd3   : > { %643 = vst [vmem:[%s1254_s30 + $0x710] sm:$0xff] %v427_v2  ;;  %644 = vst [vmem:[%s1254_s30 + $0x718] sm:$0xff] %v428_v3  ;;  %v435_v10 = vld [vmem:[%s1236_s28 + $0x650] sm:$0xff]  ;;  %v436_v11 = vld [vmem:[%s1236_s28 + $0x658] sm:$0xff] }
  0xd4   : > { %645 = vst [vmem:[%s1254_s30 + $0x720] sm:$0xff] %v429_v4  ;;  %646 = vst [vmem:[%s1254_s30 + $0x728] sm:$0xff] %v430_v5  ;;  %v437_v12 = vld [vmem:[%s1236_s28 + $0x660] sm:$0xff]  ;;  %v438_v13 = vld [vmem:[%s1236_s28 + $0x668] sm:$0xff] }
  0xd5   : > { %647 = vst [vmem:[%s1254_s30 + $0x738] sm:$0xff] %v431_v6  ;;  %648 = vst [vmem:[%s1254_s30 + $0x740] sm:$0xff] %v432_v7  ;;  %v439_v14 = vld [vmem:[%s1236_s28 + $0x670] sm:$0xff]  ;;  %v440_v15 = vld [vmem:[%s1236_s28 + $0x678] sm:$0xff] }
  0xd6   : > { %649 = vst [vmem:[%s1254_s30 + $0x748] sm:$0xff] %v433_v8  ;;  %650 = vst [vmem:[%s1254_s30 + $0x750] sm:$0xff] %v434_v9  ;;  %v441_v16 = vld [vmem:[%s1236_s28 + $0x680] sm:$0xff]  ;;  %v442_v17 = vld [vmem:[%s1236_s28 + $0x688] sm:$0xff] }
  0xd7   : > { %651 = vst [vmem:[%s1254_s30 + $0x758] sm:$0xff] %v435_v10  ;;  %652 = vst [vmem:[%s1254_s30 + $0x760] sm:$0xff] %v436_v11  ;;  %v443_v18 = vld [vmem:[%s1236_s28 + $0x690] sm:$0xff]  ;;  %v444_v19 = vld [vmem:[%s1236_s28 + $0x698] sm:$0xff] }
  0xd8   : > { %653 = vst [vmem:[%s1254_s30 + $0x770] sm:$0xff] %v437_v12  ;;  %654 = vst [vmem:[%s1254_s30 + $0x778] sm:$0xff] %v438_v13  ;;  %v445_v20 = vld [vmem:[%s1236_s28 + $0x6a0] sm:$0xff]  ;;  %v446_v21 = vld [vmem:[%s1236_s28 + $0x6a8] sm:$0xff] }
  0xd9   : > { %655 = vst [vmem:[%s1254_s30 + $0x780] sm:$0xff] %v439_v14  ;;  %656 = vst [vmem:[%s1254_s30 + $0x788] sm:$0xff] %v440_v15  ;;  %v447_v22 = vld [vmem:[%s1236_s28 + $0x6b0] sm:$0xff]  ;;  %v448_v23 = vld [vmem:[%s1236_s28 + $0x6b8] sm:$0xff] }
  0xda   : > { %657 = vst [vmem:[%s1254_s30 + $0x790] sm:$0xff] %v441_v16  ;;  %658 = vst [vmem:[%s1254_s30 + $0x798] sm:$0xff] %v442_v17  ;;  %v665_v24 = vld [vmem:[%s1244_s29] sm:$0xff]  ;;  %v666_v25 = vld [vmem:[%s1244_s29 + $0x8] sm:$0xff] }
  0xdb   : > { %659 = vst [vmem:[%s1254_s30 + $0x7a8] sm:$0xff] %v443_v18  ;;  %660 = vst [vmem:[%s1254_s30 + $0x7b0] sm:$0xff] %v444_v19  ;;  %v667_v26 = vld [vmem:[%s1244_s29 + $0x10] sm:$0xff]  ;;  %v668_v27 = vld [vmem:[%s1244_s29 + $0x18] sm:$0xff] }
  0xdc   : > { %661 = vst [vmem:[%s1254_s30 + $0x7b8] sm:$0xff] %v445_v20  ;;  %662 = vst [vmem:[%s1254_s30 + $0x7c0] sm:$0xff] %v446_v21  ;;  %v669_v28 = vld [vmem:[%s1244_s29 + $0x20] sm:$0xff]  ;;  %v670_v29 = vld [vmem:[%s1244_s29 + $0x28] sm:$0xff] }
  0xdd   : > { %663 = vst [vmem:[%s1254_s30 + $0x7c8] sm:$0xff] %v447_v22  ;;  %664 = vst [vmem:[%s1254_s30 + $0x7d0] sm:$0xff] %v448_v23  ;;  %v671_v30 = vld [vmem:[%s1244_s29 + $0x30] sm:$0xff]  ;;  %v672_v31 = vld [vmem:[%s1244_s29 + $0x38] sm:$0xff] }
  0xde   : > { %701 = vst [vmem:[%s1254_s30 + $0x30] sm:$0xff] %v665_v24  ;;  %702 = vst [vmem:[%s1254_s30 + $0x68] sm:$0xff] %v666_v25  ;;  %v673_v32 = vld [vmem:[%s1244_s29 + $0x40] sm:$0xff]  ;;  %v674_v33 = vld [vmem:[%s1244_s29 + $0x48] sm:$0xff] }
  0xdf   : > { %703 = vst [vmem:[%s1254_s30 + $0xa0] sm:$0xff] %v667_v26  ;;  %704 = vst [vmem:[%s1254_s30 + $0xd8] sm:$0xff] %v668_v27  ;;  %v675_v34 = vld [vmem:[%s1244_s29 + $0x50] sm:$0xff]  ;;  %v676_v35 = vld [vmem:[%s1244_s29 + $0x58] sm:$0xff] }
  0xe0   : > { %705 = vst [vmem:[%s1254_s30 + $0x110] sm:$0xff] %v669_v28  ;;  %706 = vst [vmem:[%s1254_s30 + $0x148] sm:$0xff] %v670_v29  ;;  %v677_v36 = vld [vmem:[%s1244_s29 + $0x60] sm:$0xff]  ;;  %v678_v37 = vld [vmem:[%s1244_s29 + $0x68] sm:$0xff] }
  0xe1   : > { %707 = vst [vmem:[%s1254_s30 + $0x180] sm:$0xff] %v671_v30  ;;  %708 = vst [vmem:[%s1254_s30 + $0x1b8] sm:$0xff] %v672_v31  ;;  %v679_v38 = vld [vmem:[%s1244_s29 + $0x70] sm:$0xff]  ;;  %v680_v39 = vld [vmem:[%s1244_s29 + $0x78] sm:$0xff] }
  0xe2   : > { %709 = vst [vmem:[%s1254_s30 + $0x1f0] sm:$0xff] %v673_v32  ;;  %710 = vst [vmem:[%s1254_s30 + $0x228] sm:$0xff] %v674_v33  ;;  %v681_v40 = vld [vmem:[%s1244_s29 + $0x80] sm:$0xff]  ;;  %v682_v41 = vld [vmem:[%s1244_s29 + $0x88] sm:$0xff] }
  0xe3   : > { %711 = vst [vmem:[%s1254_s30 + $0x260] sm:$0xff] %v675_v34  ;;  %712 = vst [vmem:[%s1254_s30 + $0x298] sm:$0xff] %v676_v35  ;;  %v683_v42 = vld [vmem:[%s1244_s29 + $0x90] sm:$0xff]  ;;  %v684_v43 = vld [vmem:[%s1244_s29 + $0x98] sm:$0xff] }
  0xe4   : > { %713 = vst [vmem:[%s1254_s30 + $0x2d0] sm:$0xff] %v677_v36  ;;  %714 = vst [vmem:[%s1254_s30 + $0x308] sm:$0xff] %v678_v37  ;;  %v685_v44 = vld [vmem:[%s1244_s29 + $0xa0] sm:$0xff]  ;;  %v686_v45 = vld [vmem:[%s1244_s29 + $0xa8] sm:$0xff] }
  0xe5   : > { %715 = vst [vmem:[%s1254_s30 + $0x340] sm:$0xff] %v679_v38  ;;  %716 = vst [vmem:[%s1254_s30 + $0x378] sm:$0xff] %v680_v39  ;;  %v687_v46 = vld [vmem:[%s1244_s29 + $0xb0] sm:$0xff]  ;;  %v688_v47 = vld [vmem:[%s1244_s29 + $0xb8] sm:$0xff] }
  0xe6   : > { %717 = vst [vmem:[%s1254_s30 + $0x3b0] sm:$0xff] %v681_v40  ;;  %718 = vst [vmem:[%s1254_s30 + $0x3e8] sm:$0xff] %v682_v41  ;;  %v689_v48 = vld [vmem:[%s1244_s29 + $0xc0] sm:$0xff]  ;;  %v690_v49 = vld [vmem:[%s1244_s29 + $0xc8] sm:$0xff] }
  0xe7   : > { %719 = vst [vmem:[%s1254_s30 + $0x420] sm:$0xff] %v683_v42  ;;  %720 = vst [vmem:[%s1254_s30 + $0x458] sm:$0xff] %v684_v43  ;;  %v691_v50 = vld [vmem:[%s1244_s29 + $0xd0] sm:$0xff]  ;;  %v692_v51 = vld [vmem:[%s1244_s29 + $0xd8] sm:$0xff] }
  0xe8   : > { %721 = vst [vmem:[%s1254_s30 + $0x490] sm:$0xff] %v685_v44  ;;  %722 = vst [vmem:[%s1254_s30 + $0x4c8] sm:$0xff] %v686_v45  ;;  %v693_v52 = vld [vmem:[%s1244_s29 + $0xe0] sm:$0xff]  ;;  %v694_v53 = vld [vmem:[%s1244_s29 + $0xe8] sm:$0xff] }
  0xe9   : > { %723 = vst [vmem:[%s1254_s30 + $0x500] sm:$0xff] %v687_v46  ;;  %724 = vst [vmem:[%s1254_s30 + $0x538] sm:$0xff] %v688_v47  ;;  %v695_v54 = vld [vmem:[%s1244_s29 + $0xf0] sm:$0xff]  ;;  %v696_v55 = vld [vmem:[%s1244_s29 + $0xf8] sm:$0xff]  ;;  %744 = sbr.rel (!%p1826_p6) target bundleno = 269 (0x10d), region = 40 }
  0xea   : > { %725 = vst [vmem:[%s1254_s30 + $0x570] sm:$0xff] %v689_v48  ;;  %726 = vst [vmem:[%s1254_s30 + $0x5a8] sm:$0xff] %v690_v49  ;;  %v697_v56 = vld [vmem:[%s1244_s29 + $0x100] sm:$0xff]  ;;  %v698_v57 = vld [vmem:[%s1244_s29 + $0x108] sm:$0xff] }
  0xeb   : > { %727 = vst [vmem:[%s1254_s30 + $0x5e0] sm:$0xff] %v691_v50  ;;  %728 = vst [vmem:[%s1254_s30 + $0x618] sm:$0xff] %v692_v51  ;;  %v699_v58 = vld [vmem:[%s1244_s29 + $0x110] sm:$0xff]  ;;  %v700_v59 = vld [vmem:[%s1244_s29 + $0x118] sm:$0xff] }
  0xec   : > { %729 = vst [vmem:[%s1254_s30 + $0x650] sm:$0xff] %v693_v52  ;;  %730 = vst [vmem:[%s1254_s30 + $0x688] sm:$0xff] %v694_v53 }
  0xed   : > { %731 = vst [vmem:[%s1254_s30 + $0x6c0] sm:$0xff] %v695_v54  ;;  %732 = vst [vmem:[%s1254_s30 + $0x6f8] sm:$0xff] %v696_v55 }
  0xee   : > { %733 = vst [vmem:[%s1254_s30 + $0x730] sm:$0xff] %v697_v56  ;;  %734 = vst [vmem:[%s1254_s30 + $0x768] sm:$0xff] %v698_v57 }
  0xef   : > { %735 = vst [vmem:[%s1254_s30 + $0x7a0] sm:$0xff] %v699_v58  ;;  %736 = vst [vmem:[%s1254_s30 + $0x7d8] sm:$0xff] %v700_v59 }
  0xf0   : > { %s1837_s5 = smov (!%p747_p5, %s746_s5), 36 }
  0xf1   : > { %s1761_s6 = smul.u32 896, %s1837_s5 }
  0xf3   : > { %s752_s8 = ssub.s32 32256, %s1761_s6 }
  0xf4   : > { %753 = vsyncadd %s738_s20, %s752_s8  ;;  %p871_p1 = scmp.ne.s32.totalorder %s1761_s6, 0  ;;  %s892_s21 = smul.u32 32256, %s1105_s13 }
  0xf5   : > { %s759_s14 = sshll.u32 %s1254_s30, 4  ;;  %s1066_s7 = smov [#allocation7]   ;;  %s1774_s14 = int_to_ptr.vmem [resolvable:$true] %s759_s14 }
  0xf6   : > { %s1772_s27 = scalar_lea.hbm %s1821_s2, %s892_s21  ;;  %s988_s19 = scalar_lea.vmem %s1774_s14, %s1761_s6 }
  0xf7   : > { %p989_p3 = scmp.ne.s32.totalorder %s1774_s14, %s988_s19  ;;  %s992_s26 = sshll.u32 %s1066_s7, 4  ;;  %s993_s26 = int_to_ptr.vmem [resolvable:$false] %s992_s26 }
  0xf8   : > { %s994_s13 = scalar_lea.vmem %s993_s26, 64512  ;;  %p995_p9 = scmp.lt.s32.totalorder %s1774_s14, %s993_s26 }
  0xf9   : > { %p990_p4 = pnand %p989_p3, %p871_p1  ;;  %p996_p10 = scmp.lt.s32.totalorder %s994_s13, %s988_s19 }
  0xfb   : > { %p991_p7 = pneg %p990_p4  ;;  %p997_p13 = por %p996_p10, %p995_p9 }
  0xfd   : > { %p998_p8 = pnand %p997_p13, %p991_p7 }
  0xff   : > { %1001 = shalt.err (!%p998_p8)
}
 0x100   : > { %s1002_s28 = scalar_lea.hbm %s1772_s27, %s1761_s6  ;;  %s1006_s29 = scalar_lea.hbm %s1821_s2, 114688 }
 0x101   : > { %p1003_p11 = scmp.ne.s32.totalorder %s1772_s27, %s1002_s28  ;;  %p1007_p0 = scmp.lt.u32.totalorder %s1772_s27, %s1821_s2 }
 0x102   : > { %p1008_p6 = scmp.lt.u32.totalorder %s1006_s29, %s1002_s28  ;;  %p1010_p3 = scmp.lt.u32.totalorder %s1002_s28, %s1772_s27 }
 0x103   : > { %p1004_p2 = pnand %p1003_p11, %p871_p1 }
 0x104   : > { %p1009_p5 = por %p1008_p6, %p1007_p0 }
 0x105   : > { %p1005_p12 = pneg %p1004_p2 }
 0x106   : > { %p1011_p4 = por %p1010_p3, %p1009_p5 }
 0x108   : > { %p1012_p7 = pnand %p1011_p4, %p1005_p12 }
 0x10a   : > { %1015 = shalt.err (!%p1012_p7)
}
 0x10b   : > { %s1067_s3 = smov 896   ;;  %s1068_s5 = smov 56  }
 0x10c   : > { %765 = dma.vmem_to_hbm [thread:$0]  (%p871_p1), %s1774_s14, %s1761_s6, %s1772_s27, %s738_s20, %s1067_s3, %s1067_s3, %s1068_s5  }
 0x10d PF: > { %p893_p9 = scmp.ge.s32.totalorder %s1058_s12, 2  ;;  %s774_s8 = sand.u32 1, %s1046_s9  }
 0x10e   : > { %p1827_p10 = scmp.ne.s32.totalorder %s1825_s22, 0  ;;  %s775_s21 = scalar_lea.sflag [#allocation4], %s774_s8 }
 0x110   : > { %p888_p13 = pnand %p893_p9, %p1827_p10 }
 0x112   : > { %1041 = dma.done.wait (!%p888_p13), %s775_s21, 32256  }
 0x113   : > { %1043 = vsyncadd (!%p888_p13), %s775_s21, 4294935040  ;;  %p18_p8 = scmp.ge.s32.totalorder %s1109_s15, 6   ;;  %s1828_s9 = smov %s1050_s10 }
 0x114   : > { %s1829_s10 = smov %s1054_s11  ;;  %s1830_s11 = smov %s1121_s18 }
 0x115   : > { %s1831_s12 = smov %s1109_s15  ;;  %20 = sbr.rel (!%p18_p8) target bundleno = 7 (0x7), region = 86 }
 0x11c   :  { %780 = vsyncpa [#allocation3], 1 }
 0x11d   :  { %782 = vsyncpa [#allocation3 + $0x1], 1 }
 0x11e   :  { %783 = vsyncpa [#allocation6], 1 }
 0x11f   :  { %785 = vsyncpa [#allocation6 + $0x1], 1 }
 0x120   :  { %786 = vsyncpa [#allocation4], 1 }
 0x121   :  { %788 = vsyncpa [#allocation4 + $0x1], 1 }

</bundles_post_ra>
